<compile_context>
chip_gen: v6e
topology: v6e:2x2x1
jax: 0.10.0
libtpu: 0.0.40
codegen_flags: <defaults>
</compile_context>

<pallas_src>
import functools

import jax
import jax.numpy as jnp
from jax.experimental import pallas as pl
from jax.experimental.pallas import tpu as pltpu


def _lora_kernel(alpha_ref, x_ref, a_ref, b_ref, o_ref, acc_ref):
    """Grid = (M//tm, K//tk).  acc_ref is a resident (tm, rank) f32 accumulator."""
    k = pl.program_id(1)

    @pl.when(k == 0)
    def _():
        acc_ref[...] = jnp.zeros_like(acc_ref)

    # Partial (x_tile @ A_tile) on the MXU with f32 accumulation.
    acc_ref[...] += jnp.dot(
        x_ref[...], a_ref[...], preferred_element_type=jnp.float32
    )

    @pl.when(k == pl.num_programs(1) - 1)
    def _():
        # Scale the small (tm, rank) intermediate (rank << out_features),
        # then the tiny second GEMM against the resident B block.
        xa = acc_ref[...] * alpha_ref[0, 0]
        out = jnp.dot(
            xa, b_ref[...].astype(jnp.float32), preferred_element_type=jnp.float32
        )
        o_ref[...] = out.astype(o_ref.dtype)


def _pick_tile(dim, preferred, multiple):
    """Largest divisor of `dim` that is <= preferred and a multiple of `multiple`.

    Falls back to the full dim (always legal: block dim == array dim)."""
    if dim <= preferred:
        return dim
    for t in range(preferred, 0, -1):
        if dim % t == 0 and t % multiple == 0:
            return t
    return dim


@functools.partial(jax.jit, static_argnames=("tm_pref", "tk_pref"))
def lora_forward(x, A, B, alpha, *, tm_pref=256, tk_pref=512):
    """alpha * (x @ A @ B) via a single tiled Pallas TPU kernel."""
    M, K = x.shape
    K2, R = A.shape
    R2, N = B.shape
    assert K == K2 and R == R2

    # Keep both MXU operands in the same dtype (pass bf16 x/A for 2x on v6e/v7x).
    A = A.astype(x.dtype)

    # Lane-dense output: pad out_features up to a multiple of 128 so the output
    # block's stores are unmasked; slice back afterwards. Zero columns of B do
    # not change the math.
    N_pad = max(128, ((N + 127) // 128) * 128)
    if N_pad != N:
        B = jnp.pad(B, ((0, 0), (0, N_pad - N)))

    # Runtime scalar in SMEM: no recompile per alpha value, zero compute cost.
    alpha_arr = jnp.asarray(alpha, jnp.float32).reshape(1, 1)

    # Tile sizes.  Default budget (f32): x tile 256*512*4B (~0.5 MiB) * 2 bufs,
    # output tile 256*N_pad*4B, A/B resident — comfortably under the 16 MiB
    # (v5e) / 32 MiB (v6e, v7x) scoped-VMEM defaults for typical LoRA N.
    tm = _pick_tile(M, tm_pref, 8)     # second-to-last dims: multiples of 8
    tk = _pick_tile(K, tk_pref, 128)   # lane dims: multiples of 128
    grid = (M // tm, K // tk)

    out = pl.pallas_call(
        _lora_kernel,
        out_shape=jax.ShapeDtypeStruct((M, N_pad), x.dtype),
        grid_spec=pltpu.PrefetchScalarGridSpec(
            num_scalar_prefetch=0,
            grid=grid,
            in_specs=[
                # alpha: whole (1,1) array resident in SMEM.
                pl.BlockSpec(memory_space=pltpu.MemorySpace.SMEM),
                # x: tiled over (M, K).
                pl.BlockSpec((tm, tk), lambda i, k: (i, k)),
                # A: tiled over K only (rank dim is tiny, stays whole).
                pl.BlockSpec((tk, R), lambda i, k: (k, 0)),
                # B: fully resident (rank x N_pad is tiny).
                pl.BlockSpec((R, N_pad), lambda i, k: (0, 0)),
            ],
            # Output block revisited across the K (reduction) axis; written on
            # the last K step only.
            out_specs=pl.BlockSpec((tm, N_pad), lambda i, k: (i, 0)),
            scratch_shapes=[pltpu.VMEM((tm, R), jnp.float32)],
        ),
        compiler_params=pltpu.CompilerParams(
            dimension_semantics=("parallel", "arbitrary")
        ),
    )(alpha_arr, x, A, B)

    return out[:, :N] if N_pad != N else out


if __name__ == "__main__":
    # Module hyper-params (small, consistent with LoRALayer.__init__).
    in_features = 32
    out_features = 16
    rank = 8
    alpha = 4.0
    batch = 8

    key = jax.random.PRNGKey(0)
    kx, ka, kb = jax.random.split(key, 3)

    # Deterministic parameter init matching the PyTorch module:
    #   A = randn(in_features, rank) * (1 / sqrt(rank)),  B = zeros(rank, out_features)
    std = 1.0 / jnp.sqrt(jnp.float32(rank))
    A = jax.random.normal(ka, (in_features, rank), dtype=jnp.float32) * std
    B = jnp.zeros((rank, out_features), dtype=jnp.float32)

    x = jax.random.normal(kx, (batch, in_features), dtype=jnp.float32)

    # 1) Module's true init (B == 0 -> output == 0).
    out = jax.block_until_ready(lora_forward(x, A, B, alpha))
    ref = alpha * (x @ A @ B)
    assert out.shape == (batch, out_features)
    assert jnp.allclose(out, ref, atol=1e-5, rtol=1e-5)

    # 2) Nonzero B so the full matmul path is exercised (f32).
    B_nz = jax.random.normal(kb, (rank, out_features), dtype=jnp.float32) * 0.1
    out_nz = jax.block_until_ready(lora_forward(x, A, B_nz, alpha))
    ref_nz = alpha * (x @ A @ B_nz)
    assert jnp.allclose(out_nz, ref_nz, atol=1e-4, rtol=1e-4)

    # 3) Different runtime alpha reuses the same compiled kernel (SMEM scalar).
    out_a2 = jax.block_until_ready(lora_forward(x, A, B_nz, 0.5))
    assert jnp.allclose(out_a2, 0.5 * (x @ A @ B_nz), atol=1e-4, rtol=1e-4)

    # 4) bf16 fast path (v6e/v7x MXU-friendly), f32 accumulation inside.
    out_bf = jax.block_until_ready(
        lora_forward(x.astype(jnp.bfloat16), A.astype(jnp.bfloat16),
                     B_nz.astype(jnp.bfloat16), alpha)
    )
    assert jnp.allclose(out_bf.astype(jnp.float32), ref_nz, atol=5e-2, rtol=5e-2)

    print("KERNEL_OK")
</pallas_src>

<mosaic_0001>
module attributes {stable_mosaic.version = 11 : i64} {
  func.func @_lora_kernel(%arg0: i32, %arg1: i32, %arg2: memref<1x1xf32, #tpu.memory_space<smem>>, %arg3: memref<8x32xf32, #tpu.memory_space<vmem>>, %arg4: memref<32x8xf32, #tpu.memory_space<vmem>>, %arg5: memref<8x128xf32, #tpu.memory_space<vmem>>, %arg6: memref<8x128xf32, #tpu.memory_space<vmem>>, %arg7: memref<8x8xf32, #tpu.memory_space<vmem>>) attributes {dimension_semantics = [#tpu.dimension_semantics<parallel>, #tpu.dimension_semantics<arbitrary>], iteration_bounds = array<i64: 1, 1>, scalar_prefetch = 0 : i64, scratch_operands = 1 : i64, tpu.core_type = #tpu.core_type<tc>, window_params = [{transform_indices = @transform_0, window_bounds = array<i64: 1, 1>}, {transform_indices = @transform_1, window_bounds = array<i64: 8, 32>}, {transform_indices = @transform_2, window_bounds = array<i64: 32, 8>}, {pipeline_mode = #tpu.pipeline_mode<synchronous>, transform_indices = @transform_3, window_bounds = array<i64: 8, 128>}, {transform_indices = @transform_4, window_bounds = array<i64: 8, 128>}]} {
    %c0_i32 = arith.constant 0 : i32
    %0 = arith.cmpi eq, %arg1, %c0_i32 : i32
    %1 = arith.extui %0 : i1 to i32
    %c0_i32_0 = arith.constant 0 : i32
    %2 = arith.cmpi ne, %1, %c0_i32_0 : i32
    scf.if %2 {
      %cst_10 = arith.constant 0.000000e+00 : f32
      %12 = vector.broadcast %cst_10 : f32 to vector<8x8xf32>
      %c0_11 = arith.constant 0 : index
      %c0_12 = arith.constant 0 : index
      %13 = vector.load %arg7[%c0_11, %c0_12] : memref<8x8xf32, #tpu.memory_space<vmem>>, vector<8x8xf32>
      tpu.vector_store %arg7[%c0_11, %c0_12], %12 {strides = array<i32>} : memref<8x8xf32, #tpu.memory_space<vmem>>, vector<8x8xf32>,
    } else {
    }
    %c0 = arith.constant 0 : index
    %c0_1 = arith.constant 0 : index
    %3 = vector.load %arg7[%c0, %c0_1] : memref<8x8xf32, #tpu.memory_space<vmem>>, vector<8x8xf32>
    %c0_2 = arith.constant 0 : index
    %c0_3 = arith.constant 0 : index
    %4 = vector.load %arg3[%c0_2, %c0_3] : memref<8x32xf32, #tpu.memory_space<vmem>>, vector<8x32xf32>
    %c0_4 = arith.constant 0 : index
    %c0_5 = arith.constant 0 : index
    %5 = vector.load %arg4[%c0_4, %c0_5] : memref<32x8xf32, #tpu.memory_space<vmem>>, vector<32x8xf32>
    %cst = arith.constant dense<0.000000e+00> : vector<8x8xf32>
    %6 = tpu.matmul %4, %5, %cst {dimension_numbers = #tpu.dot_dimension_numbers<[1], [0], [0], [1], [0, 0, 1, 1], [], []>} : vector<8x32xf32>, vector<32x8xf32>, vector<8x8xf32> -> vector<8x8xf32>
    %7 = arith.addf %3, %6 : vector<8x8xf32>
    %c0_6 = arith.constant 0 : index
    %c0_7 = arith.constant 0 : index
    %8 = vector.load %arg7[%c0_6, %c0_7] : memref<8x8xf32, #tpu.memory_space<vmem>>, vector<8x8xf32>
    tpu.vector_store %arg7[%c0_6, %c0_7], %7 {strides = array<i32>} : memref<8x8xf32, #tpu.memory_space<vmem>>, vector<8x8xf32>,
    %c0_i32_8 = arith.constant 0 : i32
    %9 = arith.cmpi eq, %arg1, %c0_i32_8 : i32
    %10 = arith.extui %9 : i1 to i32
    %c0_i32_9 = arith.constant 0 : i32
    %11 = arith.cmpi ne, %10, %c0_i32_9 : i32
    scf.if %11 {
      %c0_10 = arith.constant 0 : index
      %c0_11 = arith.constant 0 : index
      %12 = vector.load %arg7[%c0_10, %c0_11] : memref<8x8xf32, #tpu.memory_space<vmem>>, vector<8x8xf32>
      %c0_12 = arith.constant 0 : index
      %c0_13 = arith.constant 0 : index
      %13 = memref.load %arg2[%c0_12, %c0_13] : memref<1x1xf32, #tpu.memory_space<smem>>
      %14 = vector.broadcast %13 : f32 to vector<8x8xf32>
      %15 = arith.mulf %12, %14 : vector<8x8xf32>
      %c0_14 = arith.constant 0 : index
      %c0_15 = arith.constant 0 : index
      %16 = vector.load %arg5[%c0_14, %c0_15] : memref<8x128xf32, #tpu.memory_space<vmem>>, vector<8x128xf32>
      %cst_16 = arith.constant dense<0.000000e+00> : vector<8x128xf32>
      %17 = tpu.matmul %15, %16, %cst_16 {dimension_numbers = #tpu.dot_dimension_numbers<[1], [0], [0], [1], [0, 0, 1, 1], [], []>} : vector<8x8xf32>, vector<8x128xf32>, vector<8x128xf32> -> vector<8x128xf32>
      %c0_17 = arith.constant 0 : index
      %c0_18 = arith.constant 0 : index
      %18 = vector.load %arg6[%c0_17, %c0_18] : memref<8x128xf32, #tpu.memory_space<vmem>>, vector<8x128xf32>
      tpu.vector_store %arg6[%c0_17, %c0_18], %17 {strides = array<i32>} : memref<8x128xf32, #tpu.memory_space<vmem>>, vector<8x128xf32>,
    } else {
    }
    return
  }
  func.func @transform_0(%arg0: i32, %arg1: i32) -> (i32, i32) {
    %c0_i32 = arith.constant 0 : i32
    %c0_i32_0 = arith.constant 0 : i32
    %c0_i32_1 = arith.constant 0 : i32
    return %c0_i32, %c0_i32_0 : i32, i32
  }
  func.func @transform_1(%arg0: i32, %arg1: i32) -> (i32, i32) {
    %c0_i32 = arith.constant 0 : i32
    return %arg0, %arg1 : i32, i32
  }
  func.func @transform_2(%arg0: i32, %arg1: i32) -> (i32, i32) {
    %c0_i32 = arith.constant 0 : i32
    %c0_i32_0 = arith.constant 0 : i32
    return %arg1, %c0_i32 : i32, i32
  }
  func.func @transform_3(%arg0: i32, %arg1: i32) -> (i32, i32) {
    %c0_i32 = arith.constant 0 : i32
    %c0_i32_0 = arith.constant 0 : i32
    %c0_i32_1 = arith.constant 0 : i32
    return %c0_i32, %c0_i32_0 : i32, i32
  }
  func.func @transform_4(%arg0: i32, %arg1: i32) -> (i32, i32) {
    %c0_i32 = arith.constant 0 : i32
    %c0_i32_0 = arith.constant 0 : i32
    return %arg0, %c0_i32 : i32, i32
  }
}

</mosaic_0001>

<bundles_post_ra>
// kernel: lora_forward.1
= control target key start
LH: loop header
LB: loop body
LE: loop exit
PB: predicated region body
PF: predicated region fallthrough
CT: control target
= control target key end

     0   :  { %v254_v1 = vmov 0.0   ;;  %vm255_vm0 = vmmov 0   ;;  %vm23_vm1 = vcmask 64512   ;;  %s309_s0 = inlined_call_operand.<no memory space> [shape: f32[1,1], index: 0, kind: input, shape index: {}]   ;;  %s310_s1 = inlined_call_operand.vmem [shape: f32[8,32], index: 1, kind: input, shape index: {}]   ;;  %s311_s2 = inlined_call_operand.vmem [shape: f32[32,8], index: 2, kind: input, shape index: {}]   ;;  %s312_s3 = inlined_call_operand.vmem [shape: f32[8,128], index: 3, kind: input, shape index: {}]   ;;  %s313_s4 = inlined_call_operand.hbm [shape: f32[8,128], index: 4, kind: output, shape index: {}]  }
   0x1   :  { %v30_v0 = vld [vmem:[%s311_s2 + $0x18] sm:$0xff]  ;;  %213 = vmatprep.subr.mxu0 %v254_v1  ;;  %v29_v2 = vld [vmem:[%s311_s2 + $0x10] sm:$0xff]  ;;  %221 = vmatprep.mubr.msk.f32.mxu0 %vm255_vm0, %v254_v1 }
   0x2   :  { %10 = vsyncpa [#allocation5], 0  ;;  %214 = vmatpush3.msra.mxu0 %v30_v0  ;;  %24 = vst.msk [vmem:[#allocation2] sm:$0xff] %vm23_vm1, %v254_v1  ;;  %224 = vmatprep.subr.mxu1 %v254_v1  ;;  %v28_v3 = vld [vmem:[%s311_s2 + $0x8] sm:$0xff]  ;;  %v27_v4 = vld [vmem:[%s311_s2] sm:$0xff]  ;;  %vm31_vm2 = vcmask 261120   ;;  %v113_v11 = vstv %s309_s0 }
   0x3   :  { %215 = vmatprep.subr.mxu0 %v254_v1  ;;  %226 = vmatprep.mubr.msk.f32.mxu1 %vm255_vm0, %v254_v1  ;;  %v26_v5 = vld [vmem:[%s310_s1] sm:$0xff]  ;;  %s256_s1 = smov [#allocation4]  }
   0x4   :  { %216 = vmatpush3.msra.mxu0 %v29_v2  ;;  %v115_v6 = vld [vmem:[%s312_s3] sm:$0xff]  ;;  %s196_s28 = sshll.u32 %s256_s1, 4  ;;  %s197_s28 = int_to_ptr.vmem [resolvable:$true] %s196_s28 }
   0x5   :  { %217 = vmatprep.subr.mxu0 %v254_v1  ;;  %225 = vmatpush3.msra.mxu1 %v115_v6  ;;  %s232_s3 = scalar_lea.vmem %s197_s28, 128  ;;  %p237_p1 = scmp.lt.s32.totalorder %s197_s28, %s197_s28 }
   0x6   :  { %218 = vmatpush3.msra.mxu0 %v28_v3  ;;  %p233_p0 = scmp.ne.s32.totalorder %s197_s28, %s232_s3  ;;  %p238_p2 = scmp.lt.s32.totalorder %s232_s3, %s232_s3 }
   0x7   :  { %219 = vmatprep.subr.mxu0 %v254_v1 }
   0x8   :  { %220 = vmatpush3.msra.mxu0 %v27_v4  ;;  %p239_p3 = por %p238_p2, %p237_p1 }
   0x9   :  { %222 = vmatmul.mubr.msk.f32.vlgmr.msra.gmra.mxu0 %vm31_vm2, %v26_v5  ;;  %v25_v7 = vld [vmem:[#allocation2] sm:$0xff] }
   0xa   :  { %p240_p4 = pnand %p239_p3, %p233_p0 }
  0xc9   :  { %v101_v8 = vpop.f32.mrf.mxu0 }
  0xca   :  { %v105_v9 = vadd.f32 %v101_v8, %v25_v7 }
  0xcb   :  { %v223_v10 = vpop.f32.mrf.mxu0 }
  0xcc   :  { %107 = vst.msk [vmem:[#allocation2] sm:$0xff] %vm23_vm1, %v105_v9 }
  0xd3   :  { %v111_v12 = vld [vmem:[#allocation2] sm:$0xff] }
  0xd4   :  { %v114_v13 = vmul.f32 %v113_v11, %v111_v12 }
  0xd6   :  { %227 = vmatmul.mubr.msk.f32.vlgmr.msra.gmra.mxu1 %vm23_vm1, %v114_v13 }
 0x196   :  { %v185_v14 = vpop.f32.mrf.mxu1 }
 0x197   :  { %189 = vst [vmem:[#allocation4] sm:$0xff] %v185_v14 }
 0x198   :  { %v228_v15 = vpop.f32.mrf.mxu1 }
 0x199   :  { %243 = shalt.err (!%p240_p4)
}
 0x19a   :  { %199 = dma.vmem_to_hbm [thread:$0]  %s197_s28, 128, %s313_s4, [#allocation5]  }
 0x19b   :  { %252 = dma.done.wait [#allocation5], 128  }
 0x19c   :  { %253 = vsyncadd [#allocation5], 4294967168 }
 0x19d   :  { %203 = vsyncpa [#allocation5], 1 }

</bundles_post_ra>
